<compile_context>
chip_gen: v7x
topology: tpu7x:2x2x1
jax: 0.10.0
libtpu: 0.0.40
codegen_flags: <defaults>
</compile_context>

<pallas_src>
import functools

import jax
import jax.numpy as jnp
from jax.experimental import pallas as pl
from jax.experimental.pallas import tpu as pltpu


_MAX_TILE_B = 8192   # bounds the lane-padded (tile_b, 128) column buffers
_MAX_TILE_D = 2048   # feature-chunk width when D is large (multiple of 128)


def _round_up(n, m):
    return ((n + m - 1) // m) * m


def _vmem_budget_bytes():
    """Generation-aware scoped-VMEM limit (~5/8 of physical, clamped)."""
    try:
        cap = int(getattr(pltpu.get_tpu_info(), "vmem_capacity_bytes", 64 << 20))
    except Exception:
        cap = 64 << 20  # conservative fallback (v7x per-core VMEM)
    return max(32 << 20, min((cap * 5) // 8, 96 << 20))


def _choose_tiles(B, D, itemsize):
    """Pick (tile_b, tile_d, vmem_limit) sized for streaming at the HBM roofline."""
    sub = max(8, 32 // max(1, itemsize))          # packed sublane multiple
    vmem_limit = _vmem_budget_bytes()
    tile_d = D if D <= _MAX_TILE_D else _MAX_TILE_D

    # Per-row VMEM cost of one batch tile:
    #   2 double-buffered x tiles + f32 product temp + (acc + 2 out) lane-padded cols.
    per_row = 2 * tile_d * itemsize + tile_d * 4 + 3 * 128 * 4
    headroom = 6 << 20                            # weight, bias, internal scratch
    tile_b = max(sub, (vmem_limit - headroom) // per_row)
    tile_b = min(tile_b, _MAX_TILE_B, _round_up(B, sub))
    tile_b = max(sub, (tile_b // sub) * sub)
    return int(tile_b), int(tile_d), int(vmem_limit)


def _svm_kernel(x_ref, w_ref, b_ref, o_ref, acc_ref, *, d_total, tile_d, needs_mask):
    # x_ref: (tile_b, tile_d) VMEM     w_ref: (1, tile_d) VMEM (lane-dense)
    # b_ref: (1,) SMEM scalar          o_ref: (tile_b, 1) VMEM
    # acc_ref: (tile_b, 1) f32 VMEM scratch (resident across the D axis)
    k = pl.program_id(1)

    @pl.when(k == 0)
    def _():
        acc_ref[...] = jnp.zeros_like(acc_ref)

    prod = x_ref[...].astype(jnp.float32) * w_ref[...].astype(jnp.float32)
    if needs_mask:
        # Ragged last D-chunk: zero the padded lanes so garbage never reaches acc.
        lane = jax.lax.broadcasted_iota(jnp.int32, (1, tile_d), 1)
        prod = jnp.where(k * tile_d + lane < d_total, prod, 0.0)
    acc_ref[...] += jnp.sum(prod, axis=-1, keepdims=True)

    @pl.when(k == pl.num_programs(1) - 1)
    def _():
        o_ref[...] = (acc_ref[...] + b_ref[0]).astype(o_ref.dtype)


def svm_forward(x, weight, bias):
    """x: (B, D); weight: (1, D) (PyTorch nn.Linear layout); bias: (1,).

    Returns (B,) float32 — matches torch's self.linear(input).flatten().
    """
    B, D = x.shape
    itemsize = jnp.dtype(x.dtype).itemsize
    tile_b, tile_d, vmem_limit = _choose_tiles(B, D, itemsize)
    nb = pl.cdiv(B, tile_b)
    nk = pl.cdiv(D, tile_d)
    needs_mask = (D % tile_d) != 0

    w_row = weight.reshape(1, D).astype(jnp.float32)   # lane-dense weight row
    b = bias.reshape(1).astype(jnp.float32)            # SMEM scalar

    kernel = functools.partial(
        _svm_kernel, d_total=D, tile_d=tile_d, needs_mask=needs_mask)

    out = pl.pallas_call(
        kernel,
        out_shape=jax.ShapeDtypeStruct((B, 1), jnp.float32),
        grid_spec=pltpu.PrefetchScalarGridSpec(
            num_scalar_prefetch=0,
            grid=(nb, nk),                                            # batch, D-chunks
            in_specs=[
                pl.BlockSpec((tile_b, tile_d), lambda i, k: (i, k)),  # x tile
                pl.BlockSpec((1, tile_d), lambda i, k: (0, k)),       # weight chunk
                pl.BlockSpec(memory_space=pltpu.MemorySpace.SMEM),    # bias
            ],
            out_specs=pl.BlockSpec((tile_b, 1), lambda i, k: (i, 0)), # revisited over k
            scratch_shapes=[pltpu.VMEM((tile_b, 1), jnp.float32)],
        ),
        compiler_params=pltpu.CompilerParams(
            dimension_semantics=("parallel", "arbitrary"),
            vmem_limit_bytes=vmem_limit,
        ),
    )(x, w_row, b)

    return out.reshape(-1)   # flatten() — no batch padding to strip


if __name__ == "__main__":
    key = jax.random.PRNGKey(0)
    k_x, k_w, k_b = jax.random.split(key, 3)

    batch = 8
    input_dim = 32

    x = jax.random.normal(k_x, (batch, input_dim), dtype=jnp.float32)

    # Deterministic init mimicking nn.Linear's uniform(-1/sqrt(D), 1/sqrt(D))
    bound = 1.0 / (input_dim ** 0.5)
    weight = jax.random.uniform(k_w, (1, input_dim), dtype=jnp.float32,
                                minval=-bound, maxval=bound)
    bias = jax.random.uniform(k_b, (1,), dtype=jnp.float32,
                              minval=-bound, maxval=bound)

    out = svm_forward(x, weight, bias)
    jax.block_until_ready(out)

    # sanity check against plain-JAX reference
    ref = (x @ weight.T + bias).reshape(-1)
    assert out.shape == (batch,)
    assert jnp.allclose(out, ref, atol=1e-5, rtol=1e-5)

    print("KERNEL_OK")
</pallas_src>

<mosaic_0001>
module attributes {stable_mosaic.version = 11 : i64} {
  func.func @_svm_kernel(%arg0: i32, %arg1: i32, %arg2: memref<8x32xf32, #tpu.memory_space<vmem>>, %arg3: memref<1x32xf32, #tpu.memory_space<vmem>>, %arg4: memref<1xf32, #tpu.memory_space<smem>>, %arg5: memref<8x1xf32, #tpu.memory_space<vmem>>, %arg6: memref<8x1xf32, #tpu.memory_space<vmem>>) attributes {dimension_semantics = [#tpu.dimension_semantics<parallel>, #tpu.dimension_semantics<arbitrary>], iteration_bounds = array<i64: 1, 1>, scalar_prefetch = 0 : i64, scratch_operands = 1 : i64, tpu.core_type = #tpu.core_type<tc>, window_params = [{transform_indices = @transform_0, window_bounds = array<i64: 8, 32>}, {transform_indices = @transform_1, window_bounds = array<i64: 1, 32>}, {transform_indices = @transform_2, window_bounds = array<i64: 1>}, {transform_indices = @transform_3, window_bounds = array<i64: 8, 1>}]} {
    %c0_i32 = arith.constant 0 : i32
    %0 = arith.cmpi eq, %arg1, %c0_i32 : i32
    %1 = arith.extui %0 : i1 to i32
    %c0_i32_0 = arith.constant 0 : i32
    %2 = arith.cmpi ne, %1, %c0_i32_0 : i32
    scf.if %2 {
      %cst_10 = arith.constant 0.000000e+00 : f32
      %15 = vector.broadcast %cst_10 : f32 to vector<8x1xf32>
      %c0_11 = arith.constant 0 : index
      %c0_12 = arith.constant 0 : index
      %16 = vector.load %arg6[%c0_11, %c0_12] : memref<8x1xf32, #tpu.memory_space<vmem>>, vector<8x1xf32>
      tpu.vector_store %arg6[%c0_11, %c0_12], %15 {strides = array<i32>} : memref<8x1xf32, #tpu.memory_space<vmem>>, vector<8x1xf32>,
    } else {
    }
    %c0 = arith.constant 0 : index
    %c0_1 = arith.constant 0 : index
    %3 = vector.load %arg2[%c0, %c0_1] : memref<8x32xf32, #tpu.memory_space<vmem>>, vector<8x32xf32>
    %c0_2 = arith.constant 0 : index
    %c0_3 = arith.constant 0 : index
    %4 = vector.load %arg3[%c0_2, %c0_3] : memref<1x32xf32, #tpu.memory_space<vmem>>, vector<1x32xf32>
    %5 = vector.broadcast %4 : vector<1x32xf32> to vector<8x32xf32>
    %6 = arith.mulf %3, %5 : vector<8x32xf32>
    %c0_4 = arith.constant 0 : index
    %c0_5 = arith.constant 0 : index
    %7 = vector.load %arg6[%c0_4, %c0_5] : memref<8x1xf32, #tpu.memory_space<vmem>>, vector<8x1xf32>
    %cst = arith.constant dense<0.000000e+00> : vector<8xf32>
    %8 = vector.multi_reduction <add>, %6, %cst [1] : vector<8x32xf32> to vector<8xf32>
    %9 = vector.shape_cast %8 : vector<8xf32> to vector<8x1xf32>
    %10 = arith.addf %7, %9 : vector<8x1xf32>
    %c0_6 = arith.constant 0 : index
    %c0_7 = arith.constant 0 : index
    %11 = vector.load %arg6[%c0_6, %c0_7] : memref<8x1xf32, #tpu.memory_space<vmem>>, vector<8x1xf32>
    tpu.vector_store %arg6[%c0_6, %c0_7], %10 {strides = array<i32>} : memref<8x1xf32, #tpu.memory_space<vmem>>, vector<8x1xf32>,
    %c0_i32_8 = arith.constant 0 : i32
    %12 = arith.cmpi eq, %arg1, %c0_i32_8 : i32
    %13 = arith.extui %12 : i1 to i32
    %c0_i32_9 = arith.constant 0 : i32
    %14 = arith.cmpi ne, %13, %c0_i32_9 : i32
    scf.if %14 {
      %c0_10 = arith.constant 0 : index
      %c0_11 = arith.constant 0 : index
      %15 = vector.load %arg6[%c0_10, %c0_11] : memref<8x1xf32, #tpu.memory_space<vmem>>, vector<8x1xf32>
      %c0_12 = arith.constant 0 : index
      %16 = memref.load %arg4[%c0_12] : memref<1xf32, #tpu.memory_space<smem>>
      %17 = vector.broadcast %16 : f32 to vector<8x1xf32>
      %18 = arith.addf %15, %17 : vector<8x1xf32>
      %c0_13 = arith.constant 0 : index
      %c0_14 = arith.constant 0 : index
      %19 = vector.load %arg5[%c0_13, %c0_14] : memref<8x1xf32, #tpu.memory_space<vmem>>, vector<8x1xf32>
      tpu.vector_store %arg5[%c0_13, %c0_14], %18 {strides = array<i32>} : memref<8x1xf32, #tpu.memory_space<vmem>>, vector<8x1xf32>,
    } else {
    }
    return
  }
  func.func @transform_0(%arg0: i32, %arg1: i32) -> (i32, i32) {
    %c0_i32 = arith.constant 0 : i32
    return %arg0, %arg1 : i32, i32
  }
  func.func @transform_1(%arg0: i32, %arg1: i32) -> (i32, i32) {
    %c0_i32 = arith.constant 0 : i32
    %c0_i32_0 = arith.constant 0 : i32
    return %c0_i32, %arg1 : i32, i32
  }
  func.func @transform_2(%arg0: i32, %arg1: i32) -> i32 {
    %c0_i32 = arith.constant 0 : i32
    %c0_i32_0 = arith.constant 0 : i32
    return %c0_i32 : i32
  }
  func.func @transform_3(%arg0: i32, %arg1: i32) -> (i32, i32) {
    %c0_i32 = arith.constant 0 : i32
    %c0_i32_0 = arith.constant 0 : i32
    return %arg0, %c0_i32 : i32, i32
  }
}

</mosaic_0001>

<bundles_post_ra>
// kernel: tpu_custom_call.1
= control target key start
LH: loop header
LB: loop body
LE: loop exit
PB: predicated region body
PF: predicated region fallthrough
CT: control target
= control target key end

     0   :  { %9 = vsyncpa [#allocation5], 0  ;;  %s90_s12 = smov [#allocation4]   ;;  %s136_s0 = inlined_call_operand.hbm [shape: f32[8,32], index: 0, kind: input, shape index: {}]   ;;  %s137_s1 = inlined_call_operand.vmem [shape: f32[1,32], index: 1, kind: input, shape index: {}]   ;;  %s138_s2 = inlined_call_operand.<no memory space> [shape: f32[1], index: 2, kind: input, shape index: {}]   ;;  %s139_s3 = inlined_call_operand.vmem [shape: f32[8,1], index: 3, kind: output, shape index: {}]  }
   0x1   :  { %s16_s13 = sshll.u32 %s90_s12, 4  ;;  %s66_s16 = scalar_lea.hbm %s136_s0, 128  ;;  %s17_s13 = int_to_ptr.vmem [resolvable:$true] %s16_s13 }
   0x2   :  { %p67_p0 = scmp.ne.s32.totalorder %s136_s0, %s66_s16  ;;  %p70_p1 = scmp.lt.u32.totalorder %s66_s16, %s136_s0 }
   0x4   :  { %p72_p2 = pnand %p70_p1, %p67_p0 }
   0x6   :  { %75 = shalt.err (!%p72_p2)
}
   0x7   :  { %s76_s21 = scalar_lea.vmem %s17_s13, 128  ;;  %p81_p4 = scmp.lt.s32.totalorder %s17_s13, %s17_s13 }
   0x8   :  { %p77_p3 = scmp.ne.s32.totalorder %s17_s13, %s76_s21  ;;  %p82_p5 = scmp.lt.s32.totalorder %s76_s21, %s76_s21 }
   0xa   :  { %p83_p6 = por %p82_p5, %p81_p4 }
   0xc   :  { %p84_p7 = pnand %p83_p6, %p77_p3 }
   0xe   :  { %87 = shalt.err (!%p84_p7)
}
   0xf   :  { %19 = dma.hbm_to_vmem [thread:$0]  %s136_s0, 128, %s17_s13, [#allocation5]  }
  0x10   :  { %88 = dma.done.wait [#allocation5], 128  }
  0x11   :  { %89 = vsyncadd [#allocation5], 4294967168  ;;  %vm31_vm0 = vcmask 7168   ;;  %v91_v0 = vmov 0.0   ;;  %v33_v1 = vld [vmem:[#allocation4] sm:$0xff]  ;;  %vm43_vm1 = vcmask 261120   ;;  %v55_v8 = vstv %s138_s2 }
  0x12   :  { %32 = vst.msk [vmem:[#allocation2] sm:$0xff] %vm31_vm0, %v91_v0  ;;  %v63_v2 = vld [vmem:[%s137_s1] ss:$0 sm:$0xff] }
  0x13   :  { %v41_v3 = vmul.f32 %v63_v2, %v33_v1 }
  0x15   :  { %v44_v4 = vsel %vm43_vm1, %v41_v3, 0.0 }
  0x16   :  { %45 = vadd.xlane.f32.xlu0 %v44_v4 }
  0x19   :  { %v42_v5 = vld [vmem:[#allocation2] sm:$0xff] }
  0xa3   :  { %v46_v6 = vpop.xlane.xlu0 %45 }
  0xa4   :  { %v47_v7 = vadd.f32 %v46_v6, %v42_v5 }
  0xa6   :  { %49 = vst.msk [vmem:[#allocation2] sm:$0xff] %vm31_vm0, %v47_v7 }
  0xad   :  { %v53_v9 = vld [vmem:[#allocation2] sm:$0xff] }
  0xae   :  { %v56_v10 = vadd.f32 %v55_v8, %v53_v9 }
  0xb0   :  { %57 = vst.msk [vmem:[%s139_s3] sm:$0xff] %vm31_vm0, %v56_v10 }
  0xb1   :  { %62 = vsyncpa [#allocation5], 1 }

</bundles_post_ra>
